<compile_context>
chip_gen: v7x
topology: tpu7x:2x2x1
jax: 0.10.0
libtpu: 0.0.40
codegen_flags: <defaults>
</compile_context>

<pallas_src>
import jax
import jax.numpy as jnp
from jax.experimental import pallas as pl
from jax.experimental.pallas import tpu as pltpu


def conv1x1_tanh_kernel(w_ref, x_ref, o_ref):
    # w_ref: (OC,)      float32 in SMEM   (conv weights, kernel dim squeezed)
    # x_ref: (B, 1, TL) float32 in VMEM   (one lane-dense tile along L)
    # o_ref: (B, OC, TL) float32 in VMEM
    x = x_ref[...]                      # load the input tile once
    oc_n = o_ref.shape[1]
    for oc in range(oc_n):              # static unroll, OC = 4
        # scalar (SMEM) * vector -> VPU broadcast multiply; tanh -> EUP
        o_ref[:, oc:oc + 1, :] = jnp.tanh(w_ref[oc] * x)


def model_tanh_forward(x, w):
    """x: (B, 1, L) float32, w: (OC, 1, 1) float32 -> (B, OC, L) float32."""
    B, IC, L = x.shape
    OC = w.shape[0]
    assert IC == 1 and w.shape == (OC, IC, 1), "module is Conv1d(1, 4, 1, bias=False)"
    w_vec = w.reshape(OC)

    # Lane-dense tiling along L: pad to a multiple of TL (TL a multiple of 128).
    # Small TL keeps per-step double-buffered VMEM tiny (fits v7x's 64 MiB easily).
    TL = 128 if L <= 512 else 512
    Lp = ((L + TL - 1) // TL) * TL
    xp = x if Lp == L else jnp.pad(x, ((0, 0), (0, 0), (0, Lp - L)))
    num_l = Lp // TL

    out_p = pl.pallas_call(
        conv1x1_tanh_kernel,
        out_shape=jax.ShapeDtypeStruct((B, OC, Lp), x.dtype),
        grid_spec=pltpu.PrefetchScalarGridSpec(
            num_scalar_prefetch=0,
            grid=(num_l,),
            in_specs=[
                # 4 weights -> SMEM scalars (no (8,128) VMEM tile, no vreg load)
                pl.BlockSpec(memory_space=pltpu.MemorySpace.SMEM),
                # input tile: (B, 1, TL); second-minor dim equals full IC dim
                pl.BlockSpec((B, IC, TL), lambda l: (0, 0, l)),
            ],
            # output tile: (B, OC, TL); OC equals full dim, TL multiple of 128
            out_specs=pl.BlockSpec((B, OC, TL), lambda l: (0, 0, l)),
        ),
        compiler_params=pltpu.CompilerParams(
            dimension_semantics=("parallel",),
        ),
        cost_estimate=pl.CostEstimate(
            flops=B * OC * Lp,
            transcendentals=B * OC * Lp,
            bytes_accessed=4 * (B * IC * Lp + B * OC * Lp + OC),
        ),
    )(w_vec, xp)

    return out_p if Lp == L else out_p[:, :, :L]


if __name__ == "__main__":
    key = jax.random.PRNGKey(0)
    kx, kw = jax.random.split(key)

    # Input consistent with the module's forward: (batch, in_channels=1, length)
    B, IC, OC, L = 2, 1, 4, 16
    x = jax.random.normal(kx, (B, IC, L), dtype=jnp.float32)

    # Deterministic Conv1d weight of shape (out_channels, in_channels, kernel=1)
    # (kaiming-uniform-like scale: U(-1, 1) since fan_in = 1*1 = 1)
    w = jax.random.uniform(kw, (OC, IC, 1), dtype=jnp.float32, minval=-1.0, maxval=1.0)

    out = model_tanh_forward(x, w)
    out = jax.block_until_ready(out)

    # sanity check against plain JAX reference
    ref = jnp.tanh(jnp.einsum("oi,bil->bol", w.reshape(OC, IC), x))
    assert out.shape == (B, OC, L)
    assert jnp.allclose(out, ref, atol=1e-5), "mismatch vs reference"

    print("KERNEL_OK")
</pallas_src>

<mosaic_0001>
module attributes {stable_mosaic.version = 11 : i64} {
  func.func @conv1x1_tanh_kernel(%arg0: i32, %arg1: memref<4xf32, #tpu.memory_space<smem>>, %arg2: memref<2x1x128xf32, #tpu.memory_space<vmem>>, %arg3: memref<2x4x128xf32, #tpu.memory_space<vmem>>) attributes {dimension_semantics = [#tpu.dimension_semantics<parallel>], iteration_bounds = array<i64: 1>, scalar_prefetch = 0 : i64, scratch_operands = 0 : i64, tpu.core_type = #tpu.core_type<tc>, window_params = [{transform_indices = @transform_0, window_bounds = array<i64: 4>}, {transform_indices = @transform_1, window_bounds = array<i64: 2, 1, 128>}, {transform_indices = @transform_2, window_bounds = array<i64: 2, 4, 128>}]} {
    %c0 = arith.constant 0 : index
    %c0_0 = arith.constant 0 : index
    %c0_1 = arith.constant 0 : index
    %0 = vector.load %arg2[%c0, %c0_0, %c0_1] : memref<2x1x128xf32, #tpu.memory_space<vmem>>, vector<2x1x128xf32>
    %c0_2 = arith.constant 0 : index
    %1 = memref.load %arg1[%c0_2] : memref<4xf32, #tpu.memory_space<smem>>
    %2 = vector.broadcast %1 : f32 to vector<2x1x128xf32>
    %3 = arith.mulf %2, %0 : vector<2x1x128xf32>
    %4 = math.tanh %3 : vector<2x1x128xf32>
    %c0_3 = arith.constant 0 : index
    %c0_4 = arith.constant 0 : index
    %c0_5 = arith.constant 0 : index
    %5 = vector.load %arg3[%c0_3, %c0_4, %c0_5] : memref<2x4x128xf32, #tpu.memory_space<vmem>>, vector<2x1x128xf32>
    tpu.vector_store %arg3[%c0_3, %c0_4, %c0_5], %4 {strides = array<i32>} : memref<2x4x128xf32, #tpu.memory_space<vmem>>, vector<2x1x128xf32>,
    %c1 = arith.constant 1 : index
    %6 = memref.load %arg1[%c1] : memref<4xf32, #tpu.memory_space<smem>>
    %7 = vector.broadcast %6 : f32 to vector<2x1x128xf32>
    %8 = arith.mulf %7, %0 : vector<2x1x128xf32>
    %9 = math.tanh %8 : vector<2x1x128xf32>
    %c0_6 = arith.constant 0 : index
    %c1_7 = arith.constant 1 : index
    %c0_8 = arith.constant 0 : index
    %10 = vector.load %arg3[%c0_6, %c1_7, %c0_8] : memref<2x4x128xf32, #tpu.memory_space<vmem>>, vector<2x1x128xf32>
    tpu.vector_store %arg3[%c0_6, %c1_7, %c0_8], %9 {strides = array<i32>} : memref<2x4x128xf32, #tpu.memory_space<vmem>>, vector<2x1x128xf32>,
    %c2 = arith.constant 2 : index
    %11 = memref.load %arg1[%c2] : memref<4xf32, #tpu.memory_space<smem>>
    %12 = vector.broadcast %11 : f32 to vector<2x1x128xf32>
    %13 = arith.mulf %12, %0 : vector<2x1x128xf32>
    %14 = math.tanh %13 : vector<2x1x128xf32>
    %c0_9 = arith.constant 0 : index
    %c2_10 = arith.constant 2 : index
    %c0_11 = arith.constant 0 : index
    %15 = vector.load %arg3[%c0_9, %c2_10, %c0_11] : memref<2x4x128xf32, #tpu.memory_space<vmem>>, vector<2x1x128xf32>
    tpu.vector_store %arg3[%c0_9, %c2_10, %c0_11], %14 {strides = array<i32>} : memref<2x4x128xf32, #tpu.memory_space<vmem>>, vector<2x1x128xf32>,
    %c3 = arith.constant 3 : index
    %16 = memref.load %arg1[%c3] : memref<4xf32, #tpu.memory_space<smem>>
    %17 = vector.broadcast %16 : f32 to vector<2x1x128xf32>
    %18 = arith.mulf %17, %0 : vector<2x1x128xf32>
    %19 = math.tanh %18 : vector<2x1x128xf32>
    %c0_12 = arith.constant 0 : index
    %c3_13 = arith.constant 3 : index
    %c0_14 = arith.constant 0 : index
    %20 = vector.load %arg3[%c0_12, %c3_13, %c0_14] : memref<2x4x128xf32, #tpu.memory_space<vmem>>, vector<2x1x128xf32>
    tpu.vector_store %arg3[%c0_12, %c3_13, %c0_14], %19 {strides = array<i32>} : memref<2x4x128xf32, #tpu.memory_space<vmem>>, vector<2x1x128xf32>,
    return
  }
  func.func @transform_0(%arg0: i32) -> i32 {
    %c0_i32 = arith.constant 0 : i32
    %c0_i32_0 = arith.constant 0 : i32
    return %c0_i32 : i32
  }
  func.func @transform_1(%arg0: i32) -> (i32, i32, i32) {
    %c0_i32 = arith.constant 0 : i32
    %c0_i32_0 = arith.constant 0 : i32
    %c0_i32_1 = arith.constant 0 : i32
    return %c0_i32, %c0_i32_0, %arg0 : i32, i32, i32
  }
  func.func @transform_2(%arg0: i32) -> (i32, i32, i32) {
    %c0_i32 = arith.constant 0 : i32
    %c0_i32_0 = arith.constant 0 : i32
    %c0_i32_1 = arith.constant 0 : i32
    return %c0_i32, %c0_i32_0, %arg0 : i32, i32, i32
  }
}

</mosaic_0001>

<bundles_post_ra>
// kernel: tpu_custom_call.1
= control target key start
LH: loop header
LB: loop body
LE: loop exit
PB: predicated region body
PF: predicated region fallthrough
CT: control target
= control target key end

     0   :  { %7 = vsyncpa [#allocation4], 0  ;;  %s182_s0 = inlined_call_operand.hbm [shape: f32[4], index: 0, kind: input, shape index: {}]   ;;  %s183_s1 = inlined_call_operand.vmem [shape: f32[2,1,128], index: 1, kind: input, shape index: {}]   ;;  %s184_s2 = inlined_call_operand.hbm [shape: f32[2,4,128], index: 2, kind: output, shape index: {}]  }
   0x1   :  { %8 = vsyncpa [#allocation3], 0  ;;  %s97_s11 = scalar_lea.hbm %s182_s0, 16 }
   0x2   :  { %p98_p0 = scmp.ne.s32.totalorder %s182_s0, %s97_s11  ;;  %p101_p1 = scmp.lt.u32.totalorder %s97_s11, %s182_s0 }
   0x4   :  { %p103_p2 = pnand %p101_p1, %p98_p0 }
   0x6   :  { %106 = shalt.err (!%p103_p2)
}
   0x7   :  { %s133_s16 = smov [#allocation2]  }
   0x8   :  { %16 = dma.hbm_to_smem %s182_s0, 16, %s133_s16, [#allocation4]  }
   0x9   :  { %129 = dma.done.wait [#allocation4], 16  }
   0xa   :  { %130 = vsyncadd [#allocation4], 4294967280 }
   0xb   :  { %22 = sfence }
   0xc   :  { %s25_s19 = sld [smem:[#allocation2]]  ;;  %s74_s20 = sld [smem:[#allocation2 + $0x1]]  ;;  %v23_v0 = vld [vmem:[%s183_s1] sm:$0x1]  ;;  %v24_v1 = vld [vmem:[%s183_s1 + $0x1] sm:$0x1] }
   0xd   :  { %s75_s21 = sld [smem:[#allocation2 + $0x2]]  ;;  %s76_s22 = sld [smem:[#allocation2 + $0x3]] }
   0xe   :  { %s134_s0 = smov [#allocation5]  }
   0xf   :  { %s62_s1 = sshll.u32 %s134_s0, 4  ;;  %s63_s1 = int_to_ptr.vmem [resolvable:$true] %s62_s1 }
  0x10   :  { %s107_s27 = scalar_lea.vmem %s63_s1, 128  ;;  %p112_p4 = scmp.lt.s32.totalorder %s63_s1, %s63_s1 }
  0x11   :  { %p108_p3 = scmp.ne.s32.totalorder %s63_s1, %s107_s27  ;;  %p113_p5 = scmp.lt.s32.totalorder %s107_s27, %s107_s27 }
  0x12   :  { %v26_v2 = vstv %s25_s19  ;;  %v34_v5 = vstv %s74_s20 }
  0x13   :  { %v27_v3 = vmul.f32 %v26_v2, %v23_v0  ;;  %v28_v4 = vmul.f32 %v26_v2, %v24_v1  ;;  %v42_v6 = vstv %s75_s21  ;;  %v35_v7 = vmul.f32 %v34_v5, %v23_v0  ;;  %p114_p6 = por %p113_p5, %p112_p4 }
  0x14   :  { %v36_v8 = vmul.f32 %v34_v5, %v24_v1  ;;  %v43_v9 = vmul.f32 %v42_v6, %v23_v0  ;;  %v50_v10 = vstv %s76_s22  ;;  %v44_v11 = vmul.f32 %v42_v6, %v24_v1 }
  0x15   :  { %81 = vtanh.f32 %v27_v3  ;;  %v51_v12 = vmul.f32 %v50_v10, %v23_v0  ;;  %v52_v13 = vmul.f32 %v50_v10, %v24_v1  ;;  %p115_p7 = pnand %p114_p6, %p108_p3 }
  0x16   :  { %83 = vtanh.f32 %v28_v4 }
  0x17   :  { %85 = vtanh.f32 %v35_v7 }
  0x18   :  { %87 = vtanh.f32 %v36_v8 }
  0x19   :  { %89 = vtanh.f32 %v43_v9 }
  0x1a   :  { %91 = vtanh.f32 %v44_v11 }
  0x1b   :  { %93 = vtanh.f32 %v51_v12 }
  0x1c   :  { %95 = vtanh.f32 %v52_v13 }
  0x1f   :  { %v82_v14 = vpop.eup %81 }
  0x20   :  { %v84_v15 = vpop.eup %83  ;;  %31 = vst [vmem:[#allocation5] sm:$0x1] %v82_v14 }
  0x21   :  { %v86_v16 = vpop.eup %85  ;;  %32 = vst [vmem:[#allocation5 + $0x4] sm:$0x1] %v84_v15 }
  0x22   :  { %v88_v17 = vpop.eup %87  ;;  %39 = vst [vmem:[#allocation5 + $0x1] sm:$0x1] %v86_v16 }
  0x23   :  { %v90_v18 = vpop.eup %89  ;;  %40 = vst [vmem:[#allocation5 + $0x5] sm:$0x1] %v88_v17 }
  0x24   :  { %v92_v19 = vpop.eup %91  ;;  %47 = vst [vmem:[#allocation5 + $0x2] sm:$0x1] %v90_v18 }
  0x25   :  { %v94_v20 = vpop.eup %93  ;;  %48 = vst [vmem:[#allocation5 + $0x6] sm:$0x1] %v92_v19 }
  0x26   :  { %v96_v21 = vpop.eup %95  ;;  %55 = vst [vmem:[#allocation5 + $0x3] sm:$0x1] %v94_v20 }
  0x27   :  { %56 = vst [vmem:[#allocation5 + $0x7] sm:$0x1] %v96_v21 }
  0x28   :  { %118 = shalt.err (!%p115_p7)
}
  0x29   :  { %s119_s30 = scalar_lea.hbm %s184_s2, 128 }
  0x2a   :  { %p120_p8 = scmp.ne.s32.totalorder %s184_s2, %s119_s30  ;;  %p123_p9 = scmp.lt.u32.totalorder %s119_s30, %s184_s2 }
  0x2c   :  { %p125_p10 = pnand %p123_p9, %p120_p8 }
  0x2e   :  { %128 = shalt.err (!%p125_p10)
}
  0x2f   :  { %s135_s7 = smov 64   ;;  %s136_s8 = smov 4  }
  0x30   :  { %68 = dma.vmem_to_hbm [thread:$0]  %s63_s1, 128, %s184_s2, [#allocation3], %s135_s7, %s135_s7, %s136_s8  }
  0x31   :  { %131 = dma.done.wait [#allocation3], 128  }
  0x32   :  { %132 = vsyncadd [#allocation3], 4294967168 }
  0x33   :  { %72 = vsyncpa [#allocation3], 1 }
  0x34   :  { %73 = vsyncpa [#allocation4], 1 }

</bundles_post_ra>
